<compile_context>
chip_gen: v6e
topology: v6e:2x2x1
jax: 0.10.0
libtpu: 0.0.40
codegen_flags: <defaults>
</compile_context>

<pallas_src>
import jax
import jax.numpy as jnp
from jax.experimental import pallas as pl
from jax.experimental.pallas import tpu as pltpu

# LinearQuantLin hyper-parameters (module defaults)
BOTTOM, TOP, SIZE, ALPHA = -1.0, 1.0, 5, 0.0
BN_EPS = 1e-4  # nn.BatchNorm1d(eps=0.0001)


def _quant_weight(w, *, bottom=BOTTOM, top=TOP, size=SIZE, alpha=ALPHA):
    """Applied once in the wrapper (plain JAX), never inside the kernel.

    With the module default alpha=0 this is the identity.
    TODO(synk): exact LinearQuantLin quantizer source not provided; for
    alpha != 0 this uses uniform quantization to `size` levels in
    [bottom, top] blended with the full-precision weight.
    """
    if alpha == 0.0:
        return w
    step = (top - bottom) / (size - 1)
    wq = jnp.clip(jnp.round((w - bottom) / step) * step + bottom, bottom, top)
    return (1.0 - alpha) * w + alpha * wq


def _make_kernel(hid, out_pad, batch):
    """Build the fused MLP kernel with static sizes closed over."""
    n = float(batch)
    n2_eps = BN_EPS * n * n

    def _bn_fold(h, gamma, beta):
        # Training-mode BatchNorm1d with biased batch stats, single pass,
        # sums only (1/n and 1/n^2 folded into the (1,H) scalars):
        #   var+eps = (n*s2 - s*s + eps*n^2) / n^2
        #   scale   = gamma / sqrt(var+eps) = gamma * n * rsqrt(t)
        #   shift   = beta - mean*scale     = beta - gamma * s * rsqrt(t)
        s = jnp.sum(h, axis=0, keepdims=True)
        s2 = jnp.sum(h * h, axis=0, keepdims=True)
        t = jnp.maximum(n * s2 - s * s, 0.0) + n2_eps  # clamp: no NaN via rsqrt
        r = jax.lax.rsqrt(t)
        scale = (gamma * n) * r
        shift = beta - (gamma * s) * r
        return h * scale + shift

    def kernel(x_ref, w_ref, vec_ref, out_ref):
        def row(r, width):
            v = vec_ref[r:r + 1, :]
            return v if v.shape[1] == width else v[:, :width]

        # Hoist all parameter-row reads once at kernel entry.
        b1, g1, be1 = row(0, hid), row(1, hid), row(2, hid)
        b2, g2, be2 = row(3, hid), row(4, hid), row(5, hid)
        b3, g3, be3 = row(6, hid), row(7, hid), row(8, hid)
        b4 = row(9, out_pad)

        x = x_ref[...]  # (B, HID) lane-dense (zero-padded features)

        # layer 1: Linear -> ReLU -> BatchNorm1d
        h = jnp.dot(x, w_ref[:, 0:hid], preferred_element_type=jnp.float32) + b1
        h = _bn_fold(jnp.maximum(h, 0.0), g1, be1)

        # layer 2
        h = jnp.dot(h, w_ref[:, hid:2 * hid],
                    preferred_element_type=jnp.float32) + b2
        h = _bn_fold(jnp.maximum(h, 0.0), g2, be2)

        # layer 3
        h = jnp.dot(h, w_ref[:, 2 * hid:3 * hid],
                    preferred_element_type=jnp.float32) + b3
        h = _bn_fold(jnp.maximum(h, 0.0), g3, be3)

        # layer 4 (norm4 is defined in __init__ but NOT used in forward).
        # Padded bias columns are -1e30 so they never win the max and
        # contribute exp(...) == 0 to the softmax denominator.
        logits = jnp.dot(h, w_ref[:, 3 * hid:3 * hid + out_pad],
                         preferred_element_type=jnp.float32) + b4

        # LogSoftmax over dim=1 (lane-dense (B, OUT_PAD) store; sliced in wrapper)
        m = jnp.max(logits, axis=1, keepdims=True)
        z = logits - m
        out_ref[...] = z - jnp.log(jnp.sum(jnp.exp(z), axis=1, keepdims=True))

    return kernel


def _full_spec(shape):
    n = len(shape)
    return pl.BlockSpec(shape, lambda *_: (0,) * n)


def quant_loss_mnist_lin(x, params, alpha=ALPHA):
    """params = [w1,b1,g1,be1, w2,b2,g2,be2, w3,b3,g3,be3, w4,b4]

    Weights: (in_features, out_features). Bias / BN params: (1, features).
    """
    (w1, b1, g1, be1, w2, b2, g2, be2, w3, b3, g3, be3, w4, b4) = params
    B, in_features = x.shape
    hid = w1.shape[1]
    out_features = w4.shape[1]

    assert hid % 128 == 0, "hidden width must be a multiple of 128"
    assert w2.shape == (hid, hid) and w3.shape == (hid, hid)
    # TODO(synk): if in_features > hid (not the MNIST case), keep w1 as a
    # separate un-packed argument instead of padding its in-dim up to hid.
    assert in_features <= hid

    out_pad = ((out_features + 127) // 128) * 128
    vw = max(hid, out_pad)

    # Pre-quantize in plain JAX (identity when alpha == 0 -> zero kernel cost).
    w1q = _quant_weight(w1, alpha=alpha)
    w2q = _quant_weight(w2, alpha=alpha)
    w3q = _quant_weight(w3, alpha=alpha)
    w4q = _quant_weight(w4, alpha=alpha)

    # Single lane-dense weight slab: [w1_pad | w2 | w3 | w4_pad]  -> one DMA.
    w1p = jnp.pad(w1q, ((0, hid - in_features), (0, 0)))          # zero rows
    w4p = jnp.pad(w4q, ((0, 0), (0, out_pad - out_features)))      # zero cols
    w_slab = jnp.concatenate([w1p, w2q, w3q, w4p], axis=1)

    # x lane-padded (zero feature columns) to the slab contraction dim.
    xp = jnp.pad(x, ((0, 0), (0, hid - in_features)))

    # All ten per-feature vectors packed into a single (10, VW) slab -> one DMA.
    def pad_row(v, fill=0.0):
        return jnp.pad(v, ((0, 0), (0, vw - v.shape[1])), constant_values=fill)

    b4p = pad_row(jnp.pad(b4, ((0, 0), (0, out_pad - out_features)),
                          constant_values=-1e30))
    vecs = jnp.concatenate(
        [pad_row(v) for v in (b1, g1, be1, b2, g2, be2, b3, g3, be3)] + [b4p],
        axis=0)

    args = [xp, w_slab, vecs]

    out_padded = pl.pallas_call(
        _make_kernel(hid, out_pad, B),
        out_shape=jax.ShapeDtypeStruct((B, out_pad), jnp.float32),
        grid=(1,),
        in_specs=[_full_spec(a.shape) for a in args],
        out_specs=_full_spec((B, out_pad)),
        compiler_params=pltpu.CompilerParams(
            dimension_semantics=("arbitrary",)),
    )(*args)

    # Keep this slice before any downstream use: padded columns hold ~-1e30.
    return out_padded[:, :out_features]


def _reference(x, params, alpha=ALPHA):
    (w1, b1, g1, be1, w2, b2, g2, be2, w3, b3, g3, be3, w4, b4) = params

    def bn(h, g, be):
        mean = jnp.mean(h, axis=0, keepdims=True)
        var = jnp.mean((h - mean) ** 2, axis=0, keepdims=True)
        return g * (h - mean) * jax.lax.rsqrt(var + BN_EPS) + be

    h = jnp.maximum(x @ _quant_weight(w1, alpha=alpha) + b1, 0.0)
    h = bn(h, g1, be1)
    h = jnp.maximum(h @ _quant_weight(w2, alpha=alpha) + b2, 0.0)
    h = bn(h, g2, be2)
    h = jnp.maximum(h @ _quant_weight(w3, alpha=alpha) + b3, 0.0)
    h = bn(h, g3, be3)
    logits = h @ _quant_weight(w4, alpha=alpha) + b4
    return jax.nn.log_softmax(logits, axis=1)


if __name__ == "__main__":
    # Small shapes consistent with the MLP forward (MNIST-like but tiny).
    B, IN, HID, OUT = 8, 64, 128, 16

    key = jax.random.PRNGKey(0)
    ks = jax.random.split(key, 16)

    def lin_init(kw, kb, fan_in, fan_out):
        bound = 1.0 / jnp.sqrt(fan_in)
        w = jax.random.uniform(kw, (fan_in, fan_out), jnp.float32, -bound, bound)
        b = jax.random.uniform(kb, (1, fan_out), jnp.float32, -bound, bound)
        return w, b

    w1, b1 = lin_init(ks[0], ks[1], IN, HID)
    w2, b2 = lin_init(ks[2], ks[3], HID, HID)
    w3, b3 = lin_init(ks[4], ks[5], HID, HID)
    w4, b4 = lin_init(ks[6], ks[7], HID, OUT)

    # BatchNorm affine params (gamma=1, beta=0 as in PyTorch default init).
    g1, be1 = jnp.ones((1, HID), jnp.float32), jnp.zeros((1, HID), jnp.float32)
    g2, be2 = jnp.ones((1, HID), jnp.float32), jnp.zeros((1, HID), jnp.float32)
    g3, be3 = jnp.ones((1, HID), jnp.float32), jnp.zeros((1, HID), jnp.float32)

    params = [w1, b1, g1, be1, w2, b2, g2, be2, w3, b3, g3, be3, w4, b4]

    x = jax.random.normal(ks[8], (B, IN), jnp.float32)

    out = quant_loss_mnist_lin(x, params)
    out = jax.block_until_ready(out)

    ref = _reference(x, params)
    assert out.shape == (B, OUT)
    assert jnp.allclose(out, ref, rtol=1e-4, atol=1e-4), "mismatch vs JAX reference"

    print("KERNEL_OK")
</pallas_src>

<mosaic_0001>
module attributes {stable_mosaic.version = 11 : i64} {
  func.func @kernel(%arg0: i32, %arg1: memref<8x128xf32, #tpu.memory_space<vmem>>, %arg2: memref<128x512xf32, #tpu.memory_space<vmem>>, %arg3: memref<10x128xf32, #tpu.memory_space<vmem>>, %arg4: memref<8x128xf32, #tpu.memory_space<vmem>>) attributes {dimension_semantics = [#tpu.dimension_semantics<arbitrary>], iteration_bounds = array<i64: 1>, scalar_prefetch = 0 : i64, scratch_operands = 0 : i64, tpu.core_type = #tpu.core_type<tc>, window_params = [{pipeline_mode = #tpu.pipeline_mode<synchronous>, transform_indices = @transform_0, window_bounds = array<i64: 8, 128>}, {pipeline_mode = #tpu.pipeline_mode<synchronous>, transform_indices = @transform_1, window_bounds = array<i64: 128, 512>}, {pipeline_mode = #tpu.pipeline_mode<synchronous>, transform_indices = @transform_2, window_bounds = array<i64: 10, 128>}, {pipeline_mode = #tpu.pipeline_mode<synchronous>, transform_indices = @transform_3, window_bounds = array<i64: 8, 128>}]} {
    %c0 = arith.constant 0 : index
    %c0_0 = arith.constant 0 : index
    %0 = vector.load %arg3[%c0, %c0_0] : memref<10x128xf32, #tpu.memory_space<vmem>>, vector<1x128xf32>
    %c1 = arith.constant 1 : index
    %c0_1 = arith.constant 0 : index
    %1 = vector.load %arg3[%c1, %c0_1] : memref<10x128xf32, #tpu.memory_space<vmem>>, vector<1x128xf32>
    %c2 = arith.constant 2 : index
    %c0_2 = arith.constant 0 : index
    %2 = vector.load %arg3[%c2, %c0_2] : memref<10x128xf32, #tpu.memory_space<vmem>>, vector<1x128xf32>
    %c3 = arith.constant 3 : index
    %c0_3 = arith.constant 0 : index
    %3 = vector.load %arg3[%c3, %c0_3] : memref<10x128xf32, #tpu.memory_space<vmem>>, vector<1x128xf32>
    %c4 = arith.constant 4 : index
    %c0_4 = arith.constant 0 : index
    %4 = vector.load %arg3[%c4, %c0_4] : memref<10x128xf32, #tpu.memory_space<vmem>>, vector<1x128xf32>
    %c5 = arith.constant 5 : index
    %c0_5 = arith.constant 0 : index
    %5 = vector.load %arg3[%c5, %c0_5] : memref<10x128xf32, #tpu.memory_space<vmem>>, vector<1x128xf32>
    %c6 = arith.constant 6 : index
    %c0_6 = arith.constant 0 : index
    %6 = vector.load %arg3[%c6, %c0_6] : memref<10x128xf32, #tpu.memory_space<vmem>>, vector<1x128xf32>
    %c7 = arith.constant 7 : index
    %c0_7 = arith.constant 0 : index
    %7 = vector.load %arg3[%c7, %c0_7] : memref<10x128xf32, #tpu.memory_space<vmem>>, vector<1x128xf32>
    %c8 = arith.constant 8 : index
    %c0_8 = arith.constant 0 : index
    %8 = vector.load %arg3[%c8, %c0_8] : memref<10x128xf32, #tpu.memory_space<vmem>>, vector<1x128xf32>
    %c9 = arith.constant 9 : index
    %c0_9 = arith.constant 0 : index
    %9 = vector.load %arg3[%c9, %c0_9] : memref<10x128xf32, #tpu.memory_space<vmem>>, vector<1x128xf32>
    %c0_10 = arith.constant 0 : index
    %c0_11 = arith.constant 0 : index
    %10 = vector.load %arg1[%c0_10, %c0_11] : memref<8x128xf32, #tpu.memory_space<vmem>>, vector<8x128xf32>
    %c0_12 = arith.constant 0 : index
    %c0_13 = arith.constant 0 : index
    %11 = vector.load %arg2[%c0_12, %c0_13] : memref<128x512xf32, #tpu.memory_space<vmem>>, vector<128x128xf32>
    %cst = arith.constant dense<0.000000e+00> : vector<8x128xf32>
    %12 = tpu.matmul %10, %11, %cst {dimension_numbers = #tpu.dot_dimension_numbers<[1], [0], [0], [1], [0, 0, 1, 1], [], []>} : vector<8x128xf32>, vector<128x128xf32>, vector<8x128xf32> -> vector<8x128xf32>
    %13 = vector.broadcast %0 : vector<1x128xf32> to vector<8x128xf32>
    %14 = arith.addf %12, %13 : vector<8x128xf32>
    %cst_14 = arith.constant 0.000000e+00 : f32
    %15 = vector.broadcast %cst_14 : f32 to vector<8x128xf32>
    %16 = arith.maximumf %14, %15 : vector<8x128xf32>
    %cst_15 = arith.constant dense<0.000000e+00> : vector<128xf32>
    %17 = vector.multi_reduction <add>, %16, %cst_15 [0] : vector<8x128xf32> to vector<128xf32>
    %18 = vector.shape_cast %17 : vector<128xf32> to vector<1x128xf32>
    %19 = arith.mulf %16, %16 : vector<8x128xf32>
    %cst_16 = arith.constant dense<0.000000e+00> : vector<128xf32>
    %20 = vector.multi_reduction <add>, %19, %cst_16 [0] : vector<8x128xf32> to vector<128xf32>
    %21 = vector.shape_cast %20 : vector<128xf32> to vector<1x128xf32>
    %cst_17 = arith.constant 8.000000e+00 : f32
    %22 = vector.broadcast %cst_17 : f32 to vector<1x128xf32>
    %23 = arith.mulf %22, %21 : vector<1x128xf32>
    %24 = arith.mulf %18, %18 : vector<1x128xf32>
    %25 = arith.subf %23, %24 : vector<1x128xf32>
    %cst_18 = arith.constant 0.000000e+00 : f32
    %26 = vector.broadcast %cst_18 : f32 to vector<1x128xf32>
    %27 = arith.maximumf %25, %26 : vector<1x128xf32>
    %cst_19 = arith.constant 6.400000e-03 : f32
    %28 = vector.broadcast %cst_19 : f32 to vector<1x128xf32>
    %29 = arith.addf %27, %28 : vector<1x128xf32>
    %30 = math.rsqrt %29 : vector<1x128xf32>
    %cst_20 = arith.constant 8.000000e+00 : f32
    %31 = vector.broadcast %cst_20 : f32 to vector<1x128xf32>
    %32 = arith.mulf %1, %31 : vector<1x128xf32>
    %33 = arith.mulf %32, %30 : vector<1x128xf32>
    %34 = arith.mulf %1, %18 : vector<1x128xf32>
    %35 = arith.mulf %34, %30 : vector<1x128xf32>
    %36 = arith.subf %2, %35 : vector<1x128xf32>
    %37 = vector.broadcast %33 : vector<1x128xf32> to vector<8x128xf32>
    %38 = arith.mulf %16, %37 : vector<8x128xf32>
    %39 = vector.broadcast %36 : vector<1x128xf32> to vector<8x128xf32>
    %40 = arith.addf %38, %39 : vector<8x128xf32>
    %c0_21 = arith.constant 0 : index
    %c128 = arith.constant 128 : index
    %41 = vector.load %arg2[%c0_21, %c128] : memref<128x512xf32, #tpu.memory_space<vmem>>, vector<128x128xf32>
    %cst_22 = arith.constant dense<0.000000e+00> : vector<8x128xf32>
    %42 = tpu.matmul %40, %41, %cst_22 {dimension_numbers = #tpu.dot_dimension_numbers<[1], [0], [0], [1], [0, 0, 1, 1], [], []>} : vector<8x128xf32>, vector<128x128xf32>, vector<8x128xf32> -> vector<8x128xf32>
    %43 = vector.broadcast %3 : vector<1x128xf32> to vector<8x128xf32>
    %44 = arith.addf %42, %43 : vector<8x128xf32>
    %cst_23 = arith.constant 0.000000e+00 : f32
    %45 = vector.broadcast %cst_23 : f32 to vector<8x128xf32>
    %46 = arith.maximumf %44, %45 : vector<8x128xf32>
    %cst_24 = arith.constant dense<0.000000e+00> : vector<128xf32>
    %47 = vector.multi_reduction <add>, %46, %cst_24 [0] : vector<8x128xf32> to vector<128xf32>
    %48 = vector.shape_cast %47 : vector<128xf32> to vector<1x128xf32>
    %49 = arith.mulf %46, %46 : vector<8x128xf32>
    %cst_25 = arith.constant dense<0.000000e+00> : vector<128xf32>
    %50 = vector.multi_reduction <add>, %49, %cst_25 [0] : vector<8x128xf32> to vector<128xf32>
    %51 = vector.shape_cast %50 : vector<128xf32> to vector<1x128xf32>
    %cst_26 = arith.constant 8.000000e+00 : f32
    %52 = vector.broadcast %cst_26 : f32 to vector<1x128xf32>
    %53 = arith.mulf %52, %51 : vector<1x128xf32>
    %54 = arith.mulf %48, %48 : vector<1x128xf32>
    %55 = arith.subf %53, %54 : vector<1x128xf32>
    %cst_27 = arith.constant 0.000000e+00 : f32
    %56 = vector.broadcast %cst_27 : f32 to vector<1x128xf32>
    %57 = arith.maximumf %55, %56 : vector<1x128xf32>
    %cst_28 = arith.constant 6.400000e-03 : f32
    %58 = vector.broadcast %cst_28 : f32 to vector<1x128xf32>
    %59 = arith.addf %57, %58 : vector<1x128xf32>
    %60 = math.rsqrt %59 : vector<1x128xf32>
    %cst_29 = arith.constant 8.000000e+00 : f32
    %61 = vector.broadcast %cst_29 : f32 to vector<1x128xf32>
    %62 = arith.mulf %4, %61 : vector<1x128xf32>
    %63 = arith.mulf %62, %60 : vector<1x128xf32>
    %64 = arith.mulf %4, %48 : vector<1x128xf32>
    %65 = arith.mulf %64, %60 : vector<1x128xf32>
    %66 = arith.subf %5, %65 : vector<1x128xf32>
    %67 = vector.broadcast %63 : vector<1x128xf32> to vector<8x128xf32>
    %68 = arith.mulf %46, %67 : vector<8x128xf32>
    %69 = vector.broadcast %66 : vector<1x128xf32> to vector<8x128xf32>
    %70 = arith.addf %68, %69 : vector<8x128xf32>
    %c0_30 = arith.constant 0 : index
    %c256 = arith.constant 256 : index
    %71 = vector.load %arg2[%c0_30, %c256] : memref<128x512xf32, #tpu.memory_space<vmem>>, vector<128x128xf32>
    %cst_31 = arith.constant dense<0.000000e+00> : vector<8x128xf32>
    %72 = tpu.matmul %70, %71, %cst_31 {dimension_numbers = #tpu.dot_dimension_numbers<[1], [0], [0], [1], [0, 0, 1, 1], [], []>} : vector<8x128xf32>, vector<128x128xf32>, vector<8x128xf32> -> vector<8x128xf32>
    %73 = vector.broadcast %6 : vector<1x128xf32> to vector<8x128xf32>
    %74 = arith.addf %72, %73 : vector<8x128xf32>
    %cst_32 = arith.constant 0.000000e+00 : f32
    %75 = vector.broadcast %cst_32 : f32 to vector<8x128xf32>
    %76 = arith.maximumf %74, %75 : vector<8x128xf32>
    %cst_33 = arith.constant dense<0.000000e+00> : vector<128xf32>
    %77 = vector.multi_reduction <add>, %76, %cst_33 [0] : vector<8x128xf32> to vector<128xf32>
    %78 = vector.shape_cast %77 : vector<128xf32> to vector<1x128xf32>
    %79 = arith.mulf %76, %76 : vector<8x128xf32>
    %cst_34 = arith.constant dense<0.000000e+00> : vector<128xf32>
    %80 = vector.multi_reduction <add>, %79, %cst_34 [0] : vector<8x128xf32> to vector<128xf32>
    %81 = vector.shape_cast %80 : vector<128xf32> to vector<1x128xf32>
    %cst_35 = arith.constant 8.000000e+00 : f32
    %82 = vector.broadcast %cst_35 : f32 to vector<1x128xf32>
    %83 = arith.mulf %82, %81 : vector<1x128xf32>
    %84 = arith.mulf %78, %78 : vector<1x128xf32>
    %85 = arith.subf %83, %84 : vector<1x128xf32>
    %cst_36 = arith.constant 0.000000e+00 : f32
    %86 = vector.broadcast %cst_36 : f32 to vector<1x128xf32>
    %87 = arith.maximumf %85, %86 : vector<1x128xf32>
    %cst_37 = arith.constant 6.400000e-03 : f32
    %88 = vector.broadcast %cst_37 : f32 to vector<1x128xf32>
    %89 = arith.addf %87, %88 : vector<1x128xf32>
    %90 = math.rsqrt %89 : vector<1x128xf32>
    %cst_38 = arith.constant 8.000000e+00 : f32
    %91 = vector.broadcast %cst_38 : f32 to vector<1x128xf32>
    %92 = arith.mulf %7, %91 : vector<1x128xf32>
    %93 = arith.mulf %92, %90 : vector<1x128xf32>
    %94 = arith.mulf %7, %78 : vector<1x128xf32>
    %95 = arith.mulf %94, %90 : vector<1x128xf32>
    %96 = arith.subf %8, %95 : vector<1x128xf32>
    %97 = vector.broadcast %93 : vector<1x128xf32> to vector<8x128xf32>
    %98 = arith.mulf %76, %97 : vector<8x128xf32>
    %99 = vector.broadcast %96 : vector<1x128xf32> to vector<8x128xf32>
    %100 = arith.addf %98, %99 : vector<8x128xf32>
    %c0_39 = arith.constant 0 : index
    %c384 = arith.constant 384 : index
    %101 = vector.load %arg2[%c0_39, %c384] : memref<128x512xf32, #tpu.memory_space<vmem>>, vector<128x128xf32>
    %cst_40 = arith.constant dense<0.000000e+00> : vector<8x128xf32>
    %102 = tpu.matmul %100, %101, %cst_40 {dimension_numbers = #tpu.dot_dimension_numbers<[1], [0], [0], [1], [0, 0, 1, 1], [], []>} : vector<8x128xf32>, vector<128x128xf32>, vector<8x128xf32> -> vector<8x128xf32>
    %103 = vector.broadcast %9 : vector<1x128xf32> to vector<8x128xf32>
    %104 = arith.addf %102, %103 : vector<8x128xf32>
    %cst_41 = arith.constant dense<0xFF800000> : vector<8xf32>
    %105 = vector.multi_reduction <maximumf>, %104, %cst_41 [1] : vector<8x128xf32> to vector<8xf32>
    %106 = vector.shape_cast %105 : vector<8xf32> to vector<8x1xf32>
    %107 = vector.broadcast %106 : vector<8x1xf32> to vector<8x128xf32>
    %108 = arith.subf %104, %107 : vector<8x128xf32>
    %109 = math.exp %108 : vector<8x128xf32>
    %cst_42 = arith.constant dense<0.000000e+00> : vector<8xf32>
    %110 = vector.multi_reduction <add>, %109, %cst_42 [1] : vector<8x128xf32> to vector<8xf32>
    %111 = vector.shape_cast %110 : vector<8xf32> to vector<8x1xf32>
    %112 = math.log %111 : vector<8x1xf32>
    %113 = vector.broadcast %112 : vector<8x1xf32> to vector<8x128xf32>
    %114 = arith.subf %108, %113 : vector<8x128xf32>
    %c0_43 = arith.constant 0 : index
    %c0_44 = arith.constant 0 : index
    %115 = vector.load %arg4[%c0_43, %c0_44] : memref<8x128xf32, #tpu.memory_space<vmem>>, vector<8x128xf32>
    tpu.vector_store %arg4[%c0_43, %c0_44], %114 {strides = array<i32>} : memref<8x128xf32, #tpu.memory_space<vmem>>, vector<8x128xf32>,
    return
  }
  func.func @transform_0(%arg0: i32) -> (i32, i32) {
    %c0_i32 = arith.constant 0 : i32
    %c0_i32_0 = arith.constant 0 : i32
    %c0_i32_1 = arith.constant 0 : i32
    return %c0_i32, %c0_i32_0 : i32, i32
  }
  func.func @transform_1(%arg0: i32) -> (i32, i32) {
    %c0_i32 = arith.constant 0 : i32
    %c0_i32_0 = arith.constant 0 : i32
    %c0_i32_1 = arith.constant 0 : i32
    return %c0_i32, %c0_i32_0 : i32, i32
  }
  func.func @transform_2(%arg0: i32) -> (i32, i32) {
    %c0_i32 = arith.constant 0 : i32
    %c0_i32_0 = arith.constant 0 : i32
    %c0_i32_1 = arith.constant 0 : i32
    return %c0_i32, %c0_i32_0 : i32, i32
  }
  func.func @transform_3(%arg0: i32) -> (i32, i32) {
    %c0_i32 = arith.constant 0 : i32
    %c0_i32_0 = arith.constant 0 : i32
    %c0_i32_1 = arith.constant 0 : i32
    return %c0_i32, %c0_i32_0 : i32, i32
  }
}

</mosaic_0001>

<bundles_post_ra>
// kernel: tpu_custom_call.1
= control target key start
LH: loop header
LB: loop body
LE: loop exit
PB: predicated region body
PF: predicated region fallthrough
CT: control target
= control target key end

     0   :  { %8 = vsyncpa [#allocation3], 0  ;;  %s997_s0 = inlined_call_operand.hbm [shape: f32[8,128], index: 0, kind: input, shape index: {}]   ;;  %s998_s1 = inlined_call_operand.hbm [shape: f32[128,512], index: 1, kind: input, shape index: {}]   ;;  %s999_s2 = inlined_call_operand.hbm [shape: f32[10,128], index: 2, kind: input, shape index: {}]   ;;  %s1000_s3 = inlined_call_operand.hbm [shape: f32[8,128], index: 3, kind: output, shape index: {}]  }
   0x1   :  { %9 = vsyncpa [#allocation6], 0 }
   0x2   :  { %10 = vsyncpa [#allocation4], 0  ;;  %s875_s12 = smov [#allocation5]  }
   0x3   :  { %s26_s13 = sshll.u32 %s875_s12, 4  ;;  %s27_s13 = int_to_ptr.vmem [resolvable:$true] %s26_s13 }
   0x4   :  { %s797_s14 = scalar_lea.vmem %s27_s13, 8192  ;;  %p802_p1 = scmp.lt.s32.totalorder %s27_s13, %s27_s13 }
   0x5   :  { %p798_p0 = scmp.ne.s32.totalorder %s27_s13, %s797_s14  ;;  %p803_p2 = scmp.lt.s32.totalorder %s797_s14, %s797_s14 }
   0x7   :  { %p804_p3 = por %p803_p2, %p802_p1 }
   0x9   :  { %p805_p4 = pnand %p804_p3, %p798_p0 }
   0xb   :  { %808 = shalt.err (!%p805_p4)
}
   0xc   :  { %s876_s15 = smov 512   ;;  %s877_s16 = smov 32  }
   0xd   :  { %32 = dma.hbm_to_vmem [thread:$0]  %s998_s1, 8192, %s27_s13, [#allocation6], %s876_s15, %s876_s15, %s877_s16  }
   0xe   :  { %s878_s19 = smov [#allocation2]   ;;  %s879_s21 = smov [#allocation7]  }
   0xf   :  { %s17_s20 = sshll.u32 %s878_s19, 4  ;;  %s38_s22 = sshll.u32 %s879_s21, 4  ;;  %s18_s20 = int_to_ptr.vmem [resolvable:$true] %s17_s20  ;;  %s39_s22 = int_to_ptr.vmem [resolvable:$true] %s38_s22 }
  0x10   :  { %s817_s23 = scalar_lea.vmem %s18_s20, 128  ;;  %p822_p6 = scmp.lt.s32.totalorder %s18_s20, %s18_s20 }
  0x11   :  { %p818_p5 = scmp.ne.s32.totalorder %s18_s20, %s817_s23  ;;  %p823_p7 = scmp.lt.s32.totalorder %s817_s23, %s817_s23 }
  0x13   :  { %p824_p8 = por %p823_p7, %p822_p6 }
  0x15   :  { %p825_p9 = pnand %p824_p8, %p818_p5 }
  0x17   :  { %828 = shalt.err (!%p825_p9)
}
  0x18   :  { %20 = dma.hbm_to_vmem [thread:$0]  %s997_s0, 128, %s18_s20, [#allocation3]  }
  0x19   :  { %s837_s26 = scalar_lea.vmem %s39_s22, 256  ;;  %p842_p11 = scmp.lt.s32.totalorder %s39_s22, %s39_s22 }
  0x1a   :  { %p838_p10 = scmp.ne.s32.totalorder %s39_s22, %s837_s26  ;;  %p843_p12 = scmp.lt.s32.totalorder %s837_s26, %s837_s26 }
  0x1c   :  { %p844_p13 = por %p843_p12, %p842_p11 }
  0x1e   :  { %p845_p0 = pnand %p844_p13, %p838_p10 }
  0x20   :  { %848 = shalt.err (!%p845_p0)
}
  0x21   :  { %s880_s1 = smov 128   ;;  %s881_s27 = smov 8  }
  0x22   :  { %44 = dma.hbm_to_vmem [thread:$0]  %s999_s2, 256, %s39_s22, [#allocation6], %s880_s1, %s880_s1, %s881_s27  }
  0x23   :  { %869 = dma.done.wait [#allocation3], 128  }
  0x24   :  { %870 = vsyncadd [#allocation3], 4294967168 }
  0x25   :  { %871 = dma.done.wait [#allocation6], 8448  }
  0x26   :  { %872 = vsyncadd [#allocation6], 4294958848  ;;  %v882_v0 = vmov 0.0   ;;  %vm883_vm0 = vmmov 0   ;;  %v80_v1 = vld [vmem:[#allocation5 + $0x1e0] sm:$0xff]  ;;  %v64_v17 = vld [vmem:[#allocation2] sm:$0xff]  ;;  %v180_v57 = vlaneseq }
  0x27   :  { %629 = vmatprep.subr.mxu0 %v882_v0  ;;  %661 = vmatprep.mubr.msk.f32.mxu0 %vm883_vm0, %v882_v0  ;;  %v79_v2 = vld [vmem:[#allocation5 + $0x1c0] sm:$0xff]  ;;  %v205_v18 = vld [vmem:[#allocation5 + $0x1e8] sm:$0xff]  ;;  %s884_s0 = smov [#allocation8]  }
  0x28   :  { %664 = vmatprep.subr.mxu1 %v882_v0  ;;  %696 = vmatprep.mubr.msk.f32.mxu1 %vm883_vm0, %v882_v0  ;;  %v78_v3 = vld [vmem:[#allocation5 + $0x1a0] sm:$0xff]  ;;  %v204_v19 = vld [vmem:[#allocation5 + $0x1c8] sm:$0xff]  ;;  %v181_v58 = vshrl.u32 %v180_v57, 7  ;;  %s547_s2 = sshll.u32 %s884_s0, 4  ;;  %s548_s2 = int_to_ptr.vmem [resolvable:$true] %s547_s2 }
  0x29   :  { %630 = vmatpush3.msra.mxu0 %v80_v1  ;;  %v77_v4 = vld [vmem:[#allocation5 + $0x180] sm:$0xff]  ;;  %665 = vmatpush3.msra.mxu1 %v205_v18  ;;  %v203_v20 = vld [vmem:[#allocation5 + $0x1a8] sm:$0xff]  ;;  %v321_v18 = vld [vmem:[#allocation5 + $0xd0] sm:$0xff]  ;;  %s849_s30 = scalar_lea.vmem %s548_s2, 128  ;;  %p854_p2 = scmp.lt.s32.totalorder %s548_s2, %s548_s2 }
  0x2a   :  { %631 = vmatprep.subr.mxu0 %v882_v0  ;;  %v76_v5 = vld [vmem:[#allocation5 + $0x160] sm:$0xff]  ;;  %666 = vmatprep.subr.mxu1 %v882_v0  ;;  %v202_v21 = vld [vmem:[#allocation5 + $0x188] sm:$0xff]  ;;  %v954_v62 = vsub.s32 0, %v181_v58  ;;  %p850_p1 = scmp.ne.s32.totalorder %s548_s2, %s849_s30  ;;  %p855_p3 = scmp.lt.s32.totalorder %s849_s30, %s849_s30 }
  0x2b   :  { %632 = vmatpush3.msra.mxu0 %v79_v2  ;;  %v75_v6 = vld [vmem:[#allocation5 + $0x140] sm:$0xff]  ;;  %667 = vmatpush3.msra.mxu1 %v204_v19  ;;  %v201_v22 = vld [vmem:[#allocation5 + $0x168] sm:$0xff]  ;;  %v320_v19 = vld [vmem:[#allocation5 + $0xb0] sm:$0xff] }
  0x2c   :  { %633 = vmatprep.subr.mxu0 %v882_v0  ;;  %v74_v7 = vld [vmem:[#allocation5 + $0x120] sm:$0xff]  ;;  %668 = vmatprep.subr.mxu1 %v882_v0  ;;  %v200_v23 = vld [vmem:[#allocation5 + $0x148] sm:$0xff]  ;;  %p856_p4 = por %p855_p3, %p854_p2 }
  0x2d   :  { %634 = vmatpush3.msra.mxu0 %v78_v3  ;;  %v73_v8 = vld [vmem:[#allocation5 + $0x100] sm:$0xff]  ;;  %669 = vmatpush3.msra.mxu1 %v203_v20  ;;  %v199_v24 = vld [vmem:[#allocation5 + $0x128] sm:$0xff]  ;;  %v319_v20 = vld [vmem:[#allocation5 + $0x90] sm:$0xff] }
  0x2e   :  { %635 = vmatprep.subr.mxu0 %v882_v0  ;;  %v72_v9 = vld [vmem:[#allocation5 + $0xe0] sm:$0xff]  ;;  %670 = vmatprep.subr.mxu1 %v882_v0  ;;  %v198_v25 = vld [vmem:[#allocation5 + $0x108] sm:$0xff]  ;;  %p857_p5 = pnand %p856_p4, %p850_p1 }
  0x2f   :  { %636 = vmatpush3.msra.mxu0 %v77_v4  ;;  %v71_v10 = vld [vmem:[#allocation5 + $0xc0] sm:$0xff]  ;;  %671 = vmatpush3.msra.mxu1 %v202_v21  ;;  %v197_v26 = vld [vmem:[#allocation5 + $0xe8] sm:$0xff]  ;;  %v318_v21 = vld [vmem:[#allocation5 + $0x70] sm:$0xff] }
  0x30   :  { %637 = vmatprep.subr.mxu0 %v882_v0  ;;  %v70_v11 = vld [vmem:[#allocation5 + $0xa0] sm:$0xff]  ;;  %672 = vmatprep.subr.mxu1 %v882_v0  ;;  %v196_v27 = vld [vmem:[#allocation5 + $0xc8] sm:$0xff] }
  0x31   :  { %638 = vmatpush3.msra.mxu0 %v76_v5  ;;  %v69_v12 = vld [vmem:[#allocation5 + $0x80] sm:$0xff]  ;;  %673 = vmatpush3.msra.mxu1 %v201_v22  ;;  %v195_v28 = vld [vmem:[#allocation5 + $0xa8] sm:$0xff]  ;;  %v317_v22 = vld [vmem:[#allocation5 + $0x50] sm:$0xff] }
  0x32   :  { %639 = vmatprep.subr.mxu0 %v882_v0  ;;  %v68_v13 = vld [vmem:[#allocation5 + $0x60] sm:$0xff]  ;;  %674 = vmatprep.subr.mxu1 %v882_v0  ;;  %v194_v29 = vld [vmem:[#allocation5 + $0x88] sm:$0xff] }
  0x33   :  { %640 = vmatpush3.msra.mxu0 %v75_v6  ;;  %v67_v14 = vld [vmem:[#allocation5 + $0x40] sm:$0xff]  ;;  %675 = vmatpush3.msra.mxu1 %v200_v23  ;;  %v193_v30 = vld [vmem:[#allocation5 + $0x68] sm:$0xff]  ;;  %v316_v23 = vld [vmem:[#allocation5 + $0x30] sm:$0xff] }
  0x34   :  { %641 = vmatprep.subr.mxu0 %v882_v0  ;;  %v66_v15 = vld [vmem:[#allocation5 + $0x20] sm:$0xff]  ;;  %676 = vmatprep.subr.mxu1 %v882_v0  ;;  %v192_v31 = vld [vmem:[#allocation5 + $0x48] sm:$0xff] }
  0x35   :  { %642 = vmatpush3.msra.mxu0 %v74_v7  ;;  %v65_v16 = vld [vmem:[#allocation5] sm:$0xff]  ;;  %677 = vmatpush3.msra.mxu1 %v199_v24  ;;  %v191_v32 = vld [vmem:[#allocation5 + $0x28] sm:$0xff]  ;;  %v315_v24 = vld [vmem:[#allocation5 + $0x10] sm:$0xff] }
  0x36   :  { %643 = vmatprep.subr.mxu0 %v882_v0  ;;  %678 = vmatprep.subr.mxu1 %v882_v0  ;;  %v190_v33 = vld [vmem:[#allocation5 + $0x8] sm:$0xff]  ;;  %v557_v34 = vld [vmem:[#allocation7] ss:$0 sm:$0xff]  ;;  %v55_v59 = vld [vmem:[#allocation7 + $0x1] sm:$0x1] }
  0x37   :  { %644 = vmatpush3.msra.mxu0 %v73_v8  ;;  %679 = vmatpush3.msra.mxu1 %v198_v25  ;;  %v175_v60 = vmul.f32 8.0, %v55_v59  ;;  %v56_v1 = vld [vmem:[#allocation7 + $0x2] sm:$0x1]  ;;  %v558_v25 = vld [vmem:[#allocation7 + $0x3] ss:$0 sm:$0xff] }
  0x38   :  { %645 = vmatprep.subr.mxu0 %v882_v0  ;;  %680 = vmatprep.subr.mxu1 %v882_v0 }
  0x39   :  { %646 = vmatpush3.msra.mxu0 %v72_v9  ;;  %681 = vmatpush3.msra.mxu1 %v197_v26  ;;  %v330_v9 = vld [vmem:[#allocation5 + $0x1f0] sm:$0xff] }
  0x3a   :  { %647 = vmatprep.subr.mxu0 %v882_v0  ;;  %682 = vmatprep.subr.mxu1 %v882_v0 }
  0x3b   :  { %648 = vmatpush3.msra.mxu0 %v71_v10  ;;  %683 = vmatpush3.msra.mxu1 %v196_v27  ;;  %v329_v10 = vld [vmem:[#allocation5 + $0x1d0] sm:$0xff] }
  0x3c   :  { %649 = vmatprep.subr.mxu0 %v882_v0  ;;  %684 = vmatprep.subr.mxu1 %v882_v0 }
  0x3d   :  { %650 = vmatpush3.msra.mxu0 %v70_v11  ;;  %685 = vmatpush3.msra.mxu1 %v195_v28  ;;  %v328_v11 = vld [vmem:[#allocation5 + $0x1b0] sm:$0xff] }
  0x3e   :  { %651 = vmatprep.subr.mxu0 %v882_v0  ;;  %686 = vmatprep.subr.mxu1 %v882_v0 }
  0x3f   :  { %652 = vmatpush3.msra.mxu0 %v69_v12  ;;  %687 = vmatpush3.msra.mxu1 %v194_v29  ;;  %v327_v12 = vld [vmem:[#allocation5 + $0x190] sm:$0xff] }
  0x40   :  { %653 = vmatprep.subr.mxu0 %v882_v0  ;;  %688 = vmatprep.subr.mxu1 %v882_v0 }
  0x41   :  { %654 = vmatpush3.msra.mxu0 %v68_v13  ;;  %689 = vmatpush3.msra.mxu1 %v193_v30  ;;  %v326_v13 = vld [vmem:[#allocation5 + $0x170] sm:$0xff] }
  0x42   :  { %655 = vmatprep.subr.mxu0 %v882_v0  ;;  %690 = vmatprep.subr.mxu1 %v882_v0 }
  0x43   :  { %656 = vmatpush3.msra.mxu0 %v67_v14  ;;  %691 = vmatpush3.msra.mxu1 %v192_v31  ;;  %v325_v14 = vld [vmem:[#allocation5 + $0x150] sm:$0xff] }
  0x44   :  { %657 = vmatprep.subr.mxu0 %v882_v0  ;;  %692 = vmatprep.subr.mxu1 %v882_v0 }
  0x45   :  { %658 = vmatpush3.msra.mxu0 %v66_v15  ;;  %693 = vmatpush3.msra.mxu1 %v191_v32  ;;  %v324_v15 = vld [vmem:[#allocation5 + $0x130] sm:$0xff] }
  0x46   :  { %659 = vmatprep.subr.mxu0 %v882_v0  ;;  %694 = vmatprep.subr.mxu1 %v882_v0 }
  0x47   :  { %660 = vmatpush3.msra.mxu0 %v65_v16  ;;  %695 = vmatpush3.msra.mxu1 %v190_v33  ;;  %v323_v16 = vld [vmem:[#allocation5 + $0x110] sm:$0xff] }
  0x48   :  { %662 = vmatmul.mubr.f32.vlgmr.msra.gmra.mxu0 %v64_v17  ;;  %699 = vmatprep.subr.mxu0 %v882_v0  ;;  %v322_v17 = vld [vmem:[#allocation5 + $0xf0] sm:$0xff] }
  0x49   :  { %731 = vmatprep.mubr.msk.f32.mxu0 %vm883_vm0, %v882_v0  ;;  %734 = vmatprep.subr.mxu1 %v882_v0 }
  0x4a   :  { %700 = vmatpush3.msra.mxu0 %v330_v9  ;;  %v444_v9 = vld [vmem:[#allocation5 + $0x98] sm:$0xff] }
  0x4b   :  { %701 = vmatprep.subr.mxu0 %v882_v0 }
  0x4c   :  { %702 = vmatpush3.msra.mxu0 %v329_v10  ;;  %v443_v10 = vld [vmem:[#allocation5 + $0x78] sm:$0xff] }
  0x4d   :  { %703 = vmatprep.subr.mxu0 %v882_v0 }
  0x4e   :  { %704 = vmatpush3.msra.mxu0 %v328_v11  ;;  %v442_v11 = vld [vmem:[#allocation5 + $0x58] sm:$0xff] }
  0x4f   :  { %705 = vmatprep.subr.mxu0 %v882_v0 }
  0x50   :  { %706 = vmatpush3.msra.mxu0 %v327_v12  ;;  %v441_v12 = vld [vmem:[#allocation5 + $0x38] sm:$0xff] }
  0x51   :  { %707 = vmatprep.subr.mxu0 %v882_v0 }
  0x52   :  { %708 = vmatpush3.msra.mxu0 %v326_v13  ;;  %v440_v13 = vld [vmem:[#allocation5 + $0x18] sm:$0xff] }
  0x53   :  { %709 = vmatprep.subr.mxu0 %v882_v0 }
  0x54   :  { %710 = vmatpush3.msra.mxu0 %v325_v14  ;;  %v559_v14 = vld [vmem:[#allocation7 + $0x6] ss:$0 sm:$0xff] }
  0x55   :  { %711 = vmatprep.subr.mxu0 %v882_v0 }
  0x56   :  { %712 = vmatpush3.msra.mxu0 %v324_v15 }
  0x57   :  { %713 = vmatprep.subr.mxu0 %v882_v0 }
  0x58   :  { %714 = vmatpush3.msra.mxu0 %v323_v16 }
  0x59   :  { %715 = vmatprep.subr.mxu0 %v882_v0 }
  0x5a   :  { %716 = vmatpush3.msra.mxu0 %v322_v17 }
  0x5b   :  { %717 = vmatprep.subr.mxu0 %v882_v0 }
  0x5c   :  { %718 = vmatpush3.msra.mxu0 %v321_v18 }
  0x5d   :  { %719 = vmatprep.subr.mxu0 %v882_v0 }
  0x5e   :  { %720 = vmatpush3.msra.mxu0 %v320_v19 }
  0x5f   :  { %721 = vmatprep.subr.mxu0 %v882_v0 }
  0x60   :  { %722 = vmatpush3.msra.mxu0 %v319_v20 }
  0x61   :  { %723 = vmatprep.subr.mxu0 %v882_v0 }
  0x62   :  { %724 = vmatpush3.msra.mxu0 %v318_v21 }
  0x63   :  { %725 = vmatprep.subr.mxu0 %v882_v0 }
  0x64   :  { %726 = vmatpush3.msra.mxu0 %v317_v22 }
  0x65   :  { %727 = vmatprep.subr.mxu0 %v882_v0 }
  0x66   :  { %728 = vmatpush3.msra.mxu0 %v316_v23 }
  0x67   :  { %729 = vmatprep.subr.mxu0 %v882_v0 }
  0x68   :  { %730 = vmatpush3.msra.mxu0 %v315_v24 }
 0x108   :  { %v151_v35 = vpop.f32.mrf.mxu0 }
 0x109   :  { %v152_v36 = vadd.f32 %v557_v34, %v151_v35 }
 0x10a   :  { %v663_v37 = vpop.f32.mrf.mxu0 }
 0x10b   :  { %v155_v38 = vmax.f32 %v152_v36, 0.0 }
 0x10d   :  { %v156_v39 = vrot.slane %v155_v38, 4  ;;  %v162_v40 = vmul.f32 %v155_v38, %v155_v38 }
 0x10f   :  { %v157_v41 = vadd.f32 %v156_v39, %v155_v38  ;;  %v163_v42 = vrot.slane %v162_v40, 4 }
 0x111   :  { %v158_v43 = vrot.slane %v157_v41, 2  ;;  %v164_v44 = vadd.f32 %v163_v42, %v162_v40 }
 0x113   :  { %v159_v45 = vadd.f32 %v158_v43, %v157_v41  ;;  %v165_v46 = vrot.slane %v164_v44, 2 }
 0x115   :  { %v160_v47 = vrot.slane %v159_v45, 1  ;;  %v166_v48 = vadd.f32 %v165_v46, %v164_v44 }
 0x117   :  { %v161_v49 = vadd.f32 %v160_v47, %v159_v45  ;;  %v167_v50 = vrot.slane %v166_v48, 1 }
 0x119   :  { %v168_v51 = vadd.f32 %v167_v50, %v166_v48  ;;  %v170_v53 = vmul.f32 %v161_v49, %v161_v49  ;;  %v177_v61 = vmul.f32 %v161_v49, %v55_v59  ;;  %v58_v48 = vld [vmem:[#allocation7 + $0x4] sm:$0x1] }
 0x11a   :  { %v300_v49 = vmul.f32 8.0, %v58_v48 }
 0x11b   :  { %v169_v52 = vmul.f32 8.0, %v168_v51 }
 0x11d   :  { %v171_v54 = vsub.f32 %v169_v52, %v170_v53  ;;  %v59_v52 = vld [vmem:[#allocation7 + $0x5] sm:$0x1] }
 0x11f   :  { %v172_v55 = vmax.f32 %v171_v54, 0.0 }
 0x121   :  { %v173_v56 = vadd.f32 0.0064, %v172_v55 }
 0x123   :  { %779 = vrsqrt.f32 %v173_v56 }
 0x130   :  { %v780_v63 = vpop.eup %779 }
 0x131   :  { %v176_v2 = vmul.f32 %v780_v63, %v175_v60  ;;  %v178_v3 = vmul.f32 %v780_v63, %v177_v61  ;;  %v455_v60 = vld [vmem:[#allocation5 + $0x1f8] sm:$0xff] }
 0x132   :  { %v454_v61 = vld [vmem:[#allocation5 + $0x1d8] sm:$0xff] }
 0x133   :  { %v179_v4 = vsub.f32 %v56_v1, %v178_v3  ;;  %v183_v5 = vrot.slane %v176_v2, %v954_v62  ;;  %v453_v63 = vld [vmem:[#allocation5 + $0x1b8] sm:$0xff] }
 0x134   :  { %v452_v1 = vld [vmem:[#allocation5 + $0x198] sm:$0xff] }
 0x135   :  { %v184_v6 = vmul.f32 %v183_v5, %v155_v38  ;;  %v188_v7 = vrot.slane %v179_v4, %v954_v62  ;;  %v451_v2 = vld [vmem:[#allocation5 + $0x178] sm:$0xff] }
 0x136   :  { %v450_v3 = vld [vmem:[#allocation5 + $0x158] sm:$0xff] }
 0x137   :  { %v189_v8 = vadd.f32 %v188_v7, %v184_v6  ;;  %v449_v4 = vld [vmem:[#allocation5 + $0x138] sm:$0xff] }
 0x138   :  { %v448_v5 = vld [vmem:[#allocation5 + $0x118] sm:$0xff] }
 0x139   :  { %697 = vmatmul.mubr.f32.vlgmr.msra.gmra.mxu1 %v189_v8  ;;  %v447_v6 = vld [vmem:[#allocation5 + $0xf8] sm:$0xff] }
 0x13a   :  { %766 = vmatprep.mubr.msk.f32.mxu1 %vm883_vm0, %v882_v0  ;;  %735 = vmatpush3.msra.mxu1 %v455_v60  ;;  %v446_v7 = vld [vmem:[#allocation5 + $0xd8] sm:$0xff] }
 0x13b   :  { %736 = vmatprep.subr.mxu1 %v882_v0  ;;  %v445_v8 = vld [vmem:[#allocation5 + $0xb8] sm:$0xff] }
 0x13c   :  { %737 = vmatpush3.msra.mxu1 %v454_v61 }
 0x13d   :  { %738 = vmatprep.subr.mxu1 %v882_v0 }
 0x13e   :  { %739 = vmatpush3.msra.mxu1 %v453_v63 }
 0x13f   :  { %740 = vmatprep.subr.mxu1 %v882_v0 }
 0x140   :  { %741 = vmatpush3.msra.mxu1 %v452_v1 }
 0x141   :  { %742 = vmatprep.subr.mxu1 %v882_v0 }
 0x142   :  { %743 = vmatpush3.msra.mxu1 %v451_v2 }
 0x143   :  { %744 = vmatprep.subr.mxu1 %v882_v0 }
 0x144   :  { %745 = vmatpush3.msra.mxu1 %v450_v3 }
 0x145   :  { %746 = vmatprep.subr.mxu1 %v882_v0 }
 0x146   :  { %747 = vmatpush3.msra.mxu1 %v449_v4 }
 0x147   :  { %748 = vmatprep.subr.mxu1 %v882_v0 }
 0x148   :  { %749 = vmatpush3.msra.mxu1 %v448_v5 }
 0x149   :  { %750 = vmatprep.subr.mxu1 %v882_v0 }
 0x14a   :  { %751 = vmatpush3.msra.mxu1 %v447_v6 }
 0x14b   :  { %752 = vmatprep.subr.mxu1 %v882_v0 }
 0x14c   :  { %753 = vmatpush3.msra.mxu1 %v446_v7 }
 0x14d   :  { %754 = vmatprep.subr.mxu1 %v882_v0 }
 0x14e   :  { %755 = vmatpush3.msra.mxu1 %v445_v8 }
 0x14f   :  { %756 = vmatprep.subr.mxu1 %v882_v0 }
 0x150   :  { %757 = vmatpush3.msra.mxu1 %v444_v9 }
 0x151   :  { %758 = vmatprep.subr.mxu1 %v882_v0 }
 0x152   :  { %759 = vmatpush3.msra.mxu1 %v443_v10 }
 0x153   :  { %760 = vmatprep.subr.mxu1 %v882_v0 }
 0x154   :  { %761 = vmatpush3.msra.mxu1 %v442_v11 }
 0x155   :  { %762 = vmatprep.subr.mxu1 %v882_v0 }
 0x156   :  { %763 = vmatpush3.msra.mxu1 %v441_v12 }
 0x157   :  { %764 = vmatprep.subr.mxu1 %v882_v0 }
 0x158   :  { %765 = vmatpush3.msra.mxu1 %v440_v13 }
 0x1f9   :  { %v276_v26 = vpop.f32.mrf.mxu1 }
 0x1fa   :  { %v277_v27 = vadd.f32 %v558_v25, %v276_v26 }
 0x1fb   :  { %v698_v28 = vpop.f32.mrf.mxu1 }
 0x1fc   :  { %v280_v29 = vmax.f32 %v277_v27, 0.0 }
 0x1fe   :  { %v281_v30 = vrot.slane %v280_v29, 4  ;;  %v287_v31 = vmul.f32 %v280_v29, %v280_v29 }
 0x200   :  { %v282_v32 = vadd.f32 %v281_v30, %v280_v29  ;;  %v288_v33 = vrot.slane %v287_v31, 4 }
 0x202   :  { %v283_v34 = vrot.slane %v282_v32, 2  ;;  %v289_v35 = vadd.f32 %v288_v33, %v287_v31 }
 0x204   :  { %v284_v36 = vadd.f32 %v283_v34, %v282_v32  ;;  %v290_v37 = vrot.slane %v289_v35, 2 }
 0x206   :  { %v285_v38 = vrot.slane %v284_v36, 1  ;;  %v291_v39 = vadd.f32 %v290_v37, %v289_v35 }
 0x208   :  { %v286_v40 = vadd.f32 %v285_v38, %v284_v36  ;;  %v292_v41 = vrot.slane %v291_v39, 1  ;;  %v61_v36 = vld [vmem:[#allocation7 + $0x7] sm:$0x1] }
 0x209   :  { %v425_v37 = vmul.f32 8.0, %v61_v36 }
 0x20a   :  { %v293_v42 = vadd.f32 %v292_v41, %v291_v39  ;;  %v295_v44 = vmul.f32 %v286_v40, %v286_v40  ;;  %v302_v50 = vmul.f32 %v286_v40, %v58_v48  ;;  %v62_v40 = vld [vmem:[#allocation7 + $0x8] sm:$0x1]  ;;  %v560_v48 = vld [vmem:[#allocation7 + $0x9] ss:$0 sm:$0xff] }
 0x20c   :  { %v294_v43 = vmul.f32 8.0, %v293_v42 }
 0x20e   :  { %v296_v45 = vsub.f32 %v294_v43, %v295_v44 }
 0x210   :  { %v297_v46 = vmax.f32 %v296_v45, 0.0 }
 0x212   :  { %v298_v47 = vadd.f32 0.0064, %v297_v46 }
 0x214   :  { %781 = vrsqrt.f32 %v298_v47 }
 0x221   :  { %v782_v51 = vpop.eup %781 }
 0x222   :  { %v301_v53 = vmul.f32 %v782_v51, %v300_v49  ;;  %v303_v54 = vmul.f32 %v782_v51, %v302_v50 }
 0x224   :  { %v308_v55 = vrot.slane %v301_v53, %v954_v62  ;;  %v304_v56 = vsub.f32 %v59_v52, %v303_v54 }
 0x226   :  { %v309_v57 = vmul.f32 %v308_v55, %v280_v29  ;;  %v313_v58 = vrot.slane %v304_v56, %v954_v62 }
 0x228   :  { %v314_v59 = vadd.f32 %v313_v58, %v309_v57 }
 0x22a   :  { %732 = vmatmul.mubr.f32.vlgmr.msra.gmra.mxu0 %v314_v59 }
 0x2ea   :  { %v401_v15 = vpop.f32.mrf.mxu0 }
 0x2eb   :  { %v402_v16 = vadd.f32 %v559_v14, %v401_v15 }
 0x2ec   :  { %v733_v17 = vpop.f32.mrf.mxu0 }
 0x2ed   :  { %v405_v18 = vmax.f32 %v402_v16, 0.0 }
 0x2ef   :  { %v406_v19 = vrot.slane %v405_v18, 4  ;;  %v412_v20 = vmul.f32 %v405_v18, %v405_v18 }
 0x2f1   :  { %v407_v21 = vadd.f32 %v406_v19, %v405_v18  ;;  %v413_v22 = vrot.slane %v412_v20, 4 }
 0x2f3   :  { %v408_v23 = vrot.slane %v407_v21, 2  ;;  %v414_v24 = vadd.f32 %v413_v22, %v412_v20 }
 0x2f5   :  { %v409_v25 = vadd.f32 %v408_v23, %v407_v21  ;;  %v415_v26 = vrot.slane %v414_v24, 2 }
 0x2f7   :  { %v410_v27 = vrot.slane %v409_v25, 1  ;;  %v416_v28 = vadd.f32 %v415_v26, %v414_v24 }
 0x2f9   :  { %v411_v29 = vadd.f32 %v410_v27, %v409_v25  ;;  %v417_v30 = vrot.slane %v416_v28, 1 }
 0x2fb   :  { %v418_v31 = vadd.f32 %v417_v30, %v416_v28  ;;  %v420_v32 = vmul.f32 %v411_v29, %v411_v29  ;;  %v427_v38 = vmul.f32 %v411_v29, %v61_v36 }
 0x2fd   :  { %v419_v0 = vmul.f32 8.0, %v418_v31 }
 0x2ff   :  { %v421_v33 = vsub.f32 %v419_v0, %v420_v32 }
 0x301   :  { %v422_v34 = vmax.f32 %v421_v33, 0.0 }
 0x303   :  { %v423_v35 = vadd.f32 0.0064, %v422_v34 }
 0x305   :  { %783 = vrsqrt.f32 %v423_v35 }
 0x312   :  { %v784_v39 = vpop.eup %783 }
 0x313   :  { %v426_v41 = vmul.f32 %v784_v39, %v425_v37  ;;  %v428_v42 = vmul.f32 %v784_v39, %v427_v38 }
 0x315   :  { %v433_v43 = vrot.slane %v426_v41, %v954_v62  ;;  %v429_v44 = vsub.f32 %v62_v40, %v428_v42 }
 0x317   :  { %v434_v45 = vmul.f32 %v433_v43, %v405_v18  ;;  %v438_v46 = vrot.slane %v429_v44, %v954_v62 }
 0x319   :  { %v439_v47 = vadd.f32 %v438_v46, %v434_v45 }
 0x31b   :  { %767 = vmatmul.mubr.f32.vlgmr.msra.gmra.mxu1 %v439_v47 }
 0x3db   :  { %v526_v49 = vpop.f32.mrf.mxu1 }
 0x3dc   :  { %v527_v50 = vadd.f32 %v560_v48, %v526_v49 }
 0x3dd   :  { %v768_v51 = vpop.f32.mrf.mxu1 }
 0x3de   :  { %530 = vmax.xlane.f32.xlu0 %v527_v50 }
 0x467   :  { %v531_v52 = vpop.xlane.xlu0 %530 }
 0x468   :  { %v532_v53 = vsub.f32 %v527_v50, %v531_v52 }
 0x46a   :  { %v533_v54 = vmul.f32 1.442695, %v532_v53 }
 0x46c   :  { %785 = vpow2.f32 %v533_v54 }
 0x479   :  { %v786_v55 = vpop.eup %785 }
 0x47a   :  { %535 = vadd.xlane.f32.xlu0 %v786_v55 }
 0x503   :  { %v536_v56 = vpop.xlane.xlu0 %535 }
 0x504   :  { %787 = vlog2.f32 %v536_v56 }
 0x511   :  { %v788_v57 = vpop.eup %787 }
 0x512   :  { %v538_v58 = vmul.f32 0.6931472, %v788_v57 }
 0x514   :  { %v539_v62 = vsub.f32 %v532_v53, %v538_v58 }
 0x516   :  { %540 = vst [vmem:[#allocation8] sm:$0xff] %v539_v62 }
 0x517   :  { %860 = shalt.err (!%p857_p5)
}
 0x518   :  { %550 = dma.vmem_to_hbm [thread:$0]  %s548_s2, 128, %s1000_s3, [#allocation4]  }
 0x519   :  { %873 = dma.done.wait [#allocation4], 128  }
 0x51a   :  { %874 = vsyncadd [#allocation4], 4294967168 }
 0x51b   :  { %554 = vsyncpa [#allocation3], 1 }
 0x51c   :  { %555 = vsyncpa [#allocation6], 1 }
 0x51d   :  { %556 = vsyncpa [#allocation4], 1 }

</bundles_post_ra>
